<compile_context>
chip_gen: v5e
topology: v5e:2x2
jax: 0.10.0
libtpu: 0.0.40
codegen_flags: <defaults>
</compile_context>

<pallas_src>
import functools

import jax
import jax.numpy as jnp
from jax.experimental import pallas as pl
from jax.experimental.pallas import tpu as pltpu

MAX_TILE_N = 512                       # batch-tile upper bound (multiple of 8)
VMEM_RESIDENT_BUDGET = 24 * 1024 * 1024  # guard for large-R FRBs (v7x has 64 MiB VMEM)


# ----------------------------- Pallas kernel --------------------------------
def tsk_kernel(xaq_ref, m_ref, er_ref, ex_ref, w_ref, o_ref, *, d1):
    """One batch tile, everything on the MXU.

    xaq_ref : [TN, 2*(D+1)]   [x, 1, x*x, 1]  (quadratic-augmented input)
    m_ref   : [2*(D+1), R]    fused antecedent operand  [B_aug.T ; -A_aug.T]
    er_ref  : [R,   R*(D+1)]  0/1 expansion: (fb @ Er)[n, r*(D+1)+j] = fb[n, r]
    ex_ref  : [D+1, R*(D+1)]  0/1 tiling:    (xa @ Ex)[n, r*(D+1)+j] = xa[n, j]
    w_ref   : [R*(D+1), C]    fused first-order consequent slab (weights + bias)
    o_ref   : [TN, C]         model output (unpadded channels)
    """
    xaq = xaq_ref[...]                                                  # [TN, 2*D1]

    # --- Antecedent: log firing strength in a single MXU matmul ---
    # log_fir[n,r] = -sum_d (x-c)^2 / (2 s^2)
    log_fir = jnp.dot(xaq, m_ref[...], preferred_element_type=jnp.float32)  # [TN, R]

    # --- Stable normalized firing strengths (max-shift is exact after renorm) ---
    mmax = jnp.max(log_fir, axis=-1, keepdims=True)                     # [TN, 1]
    e = jnp.exp(log_fir - mmax)                                         # [TN, R]
    denom = jnp.sum(e, axis=-1, keepdims=True)                          # [TN, 1]
    fir_bar = e * pl.reciprocal(denom, approx=True)                     # [TN, R]

    # --- Fused first-order consequent + defuzzification (single K=R*(D+1) matmul) ---
    # T[n, r*(D+1)+j] = fir_bar[n,r] * xa[n,j]; xa is the first D+1 lanes of xaq.
    xa = xaq[:, :d1]                                                    # [TN, D1]
    t = (jnp.dot(fir_bar, er_ref[...], preferred_element_type=jnp.float32)
         * jnp.dot(xa, ex_ref[...], preferred_element_type=jnp.float32))  # [TN, K]
    o_ref[...] = jnp.dot(t, w_ref[...], preferred_element_type=jnp.float32)


# --------------------------- batch-tile selection -----------------------------
def _cdiv(a, b):
    return -(-a // b)


def _round_up(a, b):
    return _cdiv(a, b) * b


def _choose_batch_tiling(n, max_tile=MAX_TILE_N):
    """Largest multiple-of-8 tile (<= max_tile) such that the grid has >= 2 steps.

    >= 2 parallel steps keeps both v7x TensorCores busy under
    dimension_semantics=("parallel",); on single-TC v5e/v6e it is harmless.
    """
    n8 = _round_up(max(int(n), 8), 8)
    num_tiles = max(2, _cdiv(n8, max_tile))
    tile = _round_up(_cdiv(n8, num_tiles), 8)
    return tile, tile * num_tiles


# ------------------------------ JAX wrapper ----------------------------------
def _tsk_forward_impl(x, center, spread, fs_ind, con_param):
    """
    x         : [N, D]
    center    : [num_fuzzy_set, D]
    spread    : [num_fuzzy_set, D]
    fs_ind    : [R, D] int32   (FRB index table; CoCo-FRB -> fs_ind[r, d] = r)
    con_param : [C, R, D+1]    (first-order consequent parameters)
    returns   : [N, C]
    """
    N, D = x.shape
    C, R, _ = con_param.shape
    D1 = D + 1
    K = R * D1

    f32 = jnp.float32
    x = x.astype(f32)
    center = center.astype(f32)
    spread = spread.astype(f32)
    con_param = con_param.astype(f32)

    # Guard: all grid-invariant operands are kept VMEM-resident.  For FuCo-FRB
    # (R up to num_fuzzy_set**D) the W2/Er/Ex slabs can exceed v7x VMEM.
    resident_bytes = 4 * (2 * D1 * R + R * K + D1 * K + K * C)
    if resident_bytes > VMEM_RESIDENT_BUDGET:
        # TODO(synk): tile the K = R*(D+1) axis as an 'arbitrary' reduction grid
        # axis (online normalization over R, VMEM f32 accumulator) for huge FRBs.
        raise NotImplementedError(
            f"Resident rule slabs need {resident_bytes} bytes; tile the rule axis.")

    # FRB gather (cheap glue): per-rule centers/spreads  c_rule[r,d] = center[fs_ind[r,d], d]
    col = jnp.arange(D)[None, :]
    c_rule = center[fs_ind, col]                              # [R, D]
    s_rule = spread[fs_ind, col]                              # [R, D]

    # Hoisted antecedent constants (A = 1/(2 s^2), B = c/s^2, Kc = sum_d c^2/(2 s^2)).
    # s2 clamp guards spread==0 (reference would produce inf) — intentional divergence.
    s2 = jnp.maximum(s_rule * s_rule, 1e-12)
    A = 0.5 / s2                                              # [R, D]
    B = c_rule / s2                                           # [R, D]
    Kc = jnp.sum(A * c_rule * c_rule, axis=1)                 # [R]
    A_aug = jnp.concatenate([A, jnp.zeros((R, 1), f32)], axis=1)        # [R, D1]
    B_aug = jnp.concatenate([B, -Kc[:, None]], axis=1)                  # [R, D1]
    # Fused antecedent operand: log_fir = [xa, xa*xa] @ [B_aug.T ; -A_aug.T]
    M = jnp.concatenate([B_aug.T, -A_aug.T], axis=0)          # [2*D1, R]

    # Fused consequent slab: W2[r*(D+1)+j, c] = w[c,r,j+1] (j<D) / bias w[c,r,0] (j=D)
    w_first = jnp.transpose(con_param[:, :, 1:], (1, 2, 0))   # [R, D, C]
    bias = jnp.transpose(con_param[:, :, 0])[:, None, :]      # [R, 1, C]
    W2 = jnp.concatenate([w_first, bias], axis=1).reshape(K, C)          # [K, C]

    # Constant 0/1 expansion matrices (VMEM-resident, constant index_map)
    kk = jnp.arange(K)
    Er = (kk[None, :] // D1 == jnp.arange(R)[:, None]).astype(f32)       # [R,  K]
    Ex = (kk[None, :] % D1 == jnp.arange(D1)[:, None]).astype(f32)       # [D1, K]

    # Quadratic-augmented input [x, 1, x*x, 1]; pad batch to a multiple of tile_n
    xa = jnp.concatenate([x, jnp.ones((N, 1), f32)], axis=1)             # [N, D1]
    xaq = jnp.concatenate([xa, xa * xa], axis=1)                         # [N, 2*D1]

    tile_n, n_pad = _choose_batch_tiling(N)
    if n_pad != N:
        xaq = jnp.pad(xaq, ((0, n_pad - N), (0, 0)))

    grid = (n_pad // tile_n,)
    out = pl.pallas_call(
        functools.partial(tsk_kernel, d1=D1),
        out_shape=jax.ShapeDtypeStruct((n_pad, C), f32),
        grid_spec=pltpu.PrefetchScalarGridSpec(
            num_scalar_prefetch=0,
            grid=grid,
            in_specs=[
                pl.BlockSpec((tile_n, 2 * D1), lambda i: (i, 0)),  # xaq: tiled over batch
                pl.BlockSpec((2 * D1, R), lambda i: (0, 0)),       # M : resident
                pl.BlockSpec((R, K), lambda i: (0, 0)),            # Er: resident
                pl.BlockSpec((D1, K), lambda i: (0, 0)),           # Ex: resident
                pl.BlockSpec((K, C), lambda i: (0, 0)),            # W2: resident
            ],
            out_specs=pl.BlockSpec((tile_n, C), lambda i: (i, 0)),
        ),
        compiler_params=pltpu.CompilerParams(
            dimension_semantics=("parallel",),
            vmem_limit_bytes=32 * 1024 * 1024,
        ),
    )(xaq, M, Er, Ex, W2)

    return out if n_pad == N else out[:N]


# jit the whole forward so constant construction is fused/cached, not dispatched per call
tsk_forward = jax.jit(_tsk_forward_impl)


# --------------------------- pure-JAX reference -------------------------------
def tsk_reference(x, center, spread, fs_ind, con_param):
    N, D = x.shape
    mu = jnp.exp(-(x[:, None, :] - center[None]) ** 2
                 / (2.0 * spread[None] ** 2))                 # [N, num_fs, D]
    sel = mu[:, fs_ind, jnp.arange(D)]                        # [N, R, D]
    fir = jnp.prod(sel, axis=2)                               # [N, R]
    fir_bar = fir / jnp.sum(fir, axis=1, keepdims=True)       # [N, R]
    rule_out = jnp.einsum('crd,nd->nrc', con_param[:, :, 1:], x) \
        + jnp.transpose(con_param[:, :, 0])[None]             # [N, R, C]
    return jnp.einsum('nrc,nr->nc', rule_out, fir_bar)        # [N, C]


# ----------------------------------- main -------------------------------------
if __name__ == "__main__":
    # TSK(in_dim=8, out_dim=4, num_fuzzy_set=5, mf='Gaussian',
    #     frb='CoCo-FRB', tnorm='prod', order='first')
    in_dim, out_dim, num_fuzzy_set, num_sam = 8, 4, 5, 256
    num_rule = num_fuzzy_set                       # CoCo-FRB

    key = jax.random.PRNGKey(0)
    k_x, k_w = jax.random.split(key)

    # Antecedent parameters (match module __init__)
    partition = jnp.arange(num_fuzzy_set, dtype=jnp.float32) / (num_fuzzy_set - 1)
    center = jnp.tile(partition[:, None], (1, in_dim))        # [num_fs, D]
    spread = jnp.ones((num_fuzzy_set, in_dim), jnp.float32)   # [num_fs, D]

    # CoCo-FRB index table: fs_ind[r, d] = r
    fs_ind = jnp.tile(jnp.arange(num_fuzzy_set, dtype=jnp.int32)[:, None], (1, in_dim))

    # Consequent parameters: module initializes zeros; use deterministic
    # small random values so the kernel output is non-trivial.
    con_param = 0.1 * jax.random.normal(k_w, (out_dim, num_rule, in_dim + 1),
                                        dtype=jnp.float32)

    # Input samples in [0, 1] (where the fuzzy partition lives)
    x = jax.random.uniform(k_x, (num_sam, in_dim), dtype=jnp.float32)

    out = tsk_forward(x, center, spread, fs_ind, con_param)
    out = jax.block_until_ready(out)

    ref = tsk_reference(x, center, spread, fs_ind, con_param)
    assert out.shape == (num_sam, out_dim)
    # tolerance loosened slightly for pl.reciprocal(approx=True) (EUP vrcp ~2^-12 rel err)
    assert jnp.allclose(out, ref, rtol=2e-3, atol=2e-4), (out, ref)

    print("KERNEL_OK")
</pallas_src>

<mosaic_0001>
module attributes {stable_mosaic.version = 11 : i64} {
  func.func @tsk_kernel(%arg0: i32, %arg1: memref<128x18xf32, #tpu.memory_space<vmem>>, %arg2: memref<18x5xf32, #tpu.memory_space<vmem>>, %arg3: memref<5x45xf32, #tpu.memory_space<vmem>>, %arg4: memref<9x45xf32, #tpu.memory_space<vmem>>, %arg5: memref<45x4xf32, #tpu.memory_space<vmem>>, %arg6: memref<128x4xf32, #tpu.memory_space<vmem>>) attributes {dimension_semantics = [#tpu.dimension_semantics<parallel>], iteration_bounds = array<i64: 2>, scalar_prefetch = 0 : i64, scratch_operands = 0 : i64, tpu.core_type = #tpu.core_type<tc>, window_params = [{transform_indices = @transform_0, window_bounds = array<i64: 128, 18>}, {pipeline_mode = #tpu.pipeline_mode<synchronous>, transform_indices = @transform_1, window_bounds = array<i64: 18, 5>}, {pipeline_mode = #tpu.pipeline_mode<synchronous>, transform_indices = @transform_2, window_bounds = array<i64: 5, 45>}, {pipeline_mode = #tpu.pipeline_mode<synchronous>, transform_indices = @transform_3, window_bounds = array<i64: 9, 45>}, {pipeline_mode = #tpu.pipeline_mode<synchronous>, transform_indices = @transform_4, window_bounds = array<i64: 45, 4>}, {transform_indices = @transform_5, window_bounds = array<i64: 128, 4>}]} {
    %c0 = arith.constant 0 : index
    %c0_0 = arith.constant 0 : index
    %0 = vector.load %arg1[%c0, %c0_0] : memref<128x18xf32, #tpu.memory_space<vmem>>, vector<128x18xf32>
    %c0_1 = arith.constant 0 : index
    %c0_2 = arith.constant 0 : index
    %1 = vector.load %arg2[%c0_1, %c0_2] : memref<18x5xf32, #tpu.memory_space<vmem>>, vector<18x5xf32>
    %cst = arith.constant dense<0.000000e+00> : vector<128x5xf32>
    %2 = tpu.matmul %0, %1, %cst {dimension_numbers = #tpu.dot_dimension_numbers<[1], [0], [0], [1], [0, 0, 1, 1], [], []>} : vector<128x18xf32>, vector<18x5xf32>, vector<128x5xf32> -> vector<128x5xf32>
    %cst_3 = arith.constant dense<0xFF800000> : vector<128xf32>
    %3 = vector.multi_reduction <maximumf>, %2, %cst_3 [1] : vector<128x5xf32> to vector<128xf32>
    %4 = vector.shape_cast %3 : vector<128xf32> to vector<128x1xf32>
    %5 = vector.broadcast %4 : vector<128x1xf32> to vector<128x5xf32>
    %6 = arith.subf %2, %5 : vector<128x5xf32>
    %7 = math.exp %6 : vector<128x5xf32>
    %cst_4 = arith.constant dense<0.000000e+00> : vector<128xf32>
    %8 = vector.multi_reduction <add>, %7, %cst_4 [1] : vector<128x5xf32> to vector<128xf32>
    %9 = vector.shape_cast %8 : vector<128xf32> to vector<128x1xf32>
    %10 = tpu.reciprocal %9 {approx = true} : vector<128x1xf32> -> vector<128x1xf32>
    %11 = vector.broadcast %10 : vector<128x1xf32> to vector<128x5xf32>
    %12 = arith.mulf %7, %11 : vector<128x5xf32>
    %13 = vector.extract_strided_slice %0 {offsets = [0, 0], sizes = [128, 9], strides = [1, 1]} : vector<128x18xf32> to vector<128x9xf32>
    %c0_5 = arith.constant 0 : index
    %c0_6 = arith.constant 0 : index
    %14 = vector.load %arg3[%c0_5, %c0_6] : memref<5x45xf32, #tpu.memory_space<vmem>>, vector<5x45xf32>
    %cst_7 = arith.constant dense<0.000000e+00> : vector<128x45xf32>
    %15 = tpu.matmul %12, %14, %cst_7 {dimension_numbers = #tpu.dot_dimension_numbers<[1], [0], [0], [1], [0, 0, 1, 1], [], []>} : vector<128x5xf32>, vector<5x45xf32>, vector<128x45xf32> -> vector<128x45xf32>
    %c0_8 = arith.constant 0 : index
    %c0_9 = arith.constant 0 : index
    %16 = vector.load %arg4[%c0_8, %c0_9] : memref<9x45xf32, #tpu.memory_space<vmem>>, vector<9x45xf32>
    %cst_10 = arith.constant dense<0.000000e+00> : vector<128x45xf32>
    %17 = tpu.matmul %13, %16, %cst_10 {dimension_numbers = #tpu.dot_dimension_numbers<[1], [0], [0], [1], [0, 0, 1, 1], [], []>} : vector<128x9xf32>, vector<9x45xf32>, vector<128x45xf32> -> vector<128x45xf32>
    %18 = arith.mulf %15, %17 : vector<128x45xf32>
    %c0_11 = arith.constant 0 : index
    %c0_12 = arith.constant 0 : index
    %19 = vector.load %arg5[%c0_11, %c0_12] : memref<45x4xf32, #tpu.memory_space<vmem>>, vector<45x4xf32>
    %cst_13 = arith.constant dense<0.000000e+00> : vector<128x4xf32>
    %20 = tpu.matmul %18, %19, %cst_13 {dimension_numbers = #tpu.dot_dimension_numbers<[1], [0], [0], [1], [0, 0, 1, 1], [], []>} : vector<128x45xf32>, vector<45x4xf32>, vector<128x4xf32> -> vector<128x4xf32>
    %c0_14 = arith.constant 0 : index
    %c0_15 = arith.constant 0 : index
    %21 = vector.load %arg6[%c0_14, %c0_15] : memref<128x4xf32, #tpu.memory_space<vmem>>, vector<128x4xf32>
    tpu.vector_store %arg6[%c0_14, %c0_15], %20 {strides = array<i32>} : memref<128x4xf32, #tpu.memory_space<vmem>>, vector<128x4xf32>,
    return
  }
  func.func @transform_0(%arg0: i32) -> (i32, i32) {
    %c0_i32 = arith.constant 0 : i32
    %c0_i32_0 = arith.constant 0 : i32
    return %arg0, %c0_i32 : i32, i32
  }
  func.func @transform_1(%arg0: i32) -> (i32, i32) {
    %c0_i32 = arith.constant 0 : i32
    %c0_i32_0 = arith.constant 0 : i32
    %c0_i32_1 = arith.constant 0 : i32
    return %c0_i32, %c0_i32_0 : i32, i32
  }
  func.func @transform_2(%arg0: i32) -> (i32, i32) {
    %c0_i32 = arith.constant 0 : i32
    %c0_i32_0 = arith.constant 0 : i32
    %c0_i32_1 = arith.constant 0 : i32
    return %c0_i32, %c0_i32_0 : i32, i32
  }
  func.func @transform_3(%arg0: i32) -> (i32, i32) {
    %c0_i32 = arith.constant 0 : i32
    %c0_i32_0 = arith.constant 0 : i32
    %c0_i32_1 = arith.constant 0 : i32
    return %c0_i32, %c0_i32_0 : i32, i32
  }
  func.func @transform_4(%arg0: i32) -> (i32, i32) {
    %c0_i32 = arith.constant 0 : i32
    %c0_i32_0 = arith.constant 0 : i32
    %c0_i32_1 = arith.constant 0 : i32
    return %c0_i32, %c0_i32_0 : i32, i32
  }
  func.func @transform_5(%arg0: i32) -> (i32, i32) {
    %c0_i32 = arith.constant 0 : i32
    %c0_i32_0 = arith.constant 0 : i32
    return %arg0, %c0_i32 : i32, i32
  }
}

</mosaic_0001>

<bundles_post_ra>
// kernel: _tsk_forward_impl.1
= control target key start
LH: loop header
LB: loop body
LE: loop exit
PB: predicated region body
PF: predicated region fallthrough
CT: control target
= control target key end

     0   :  { %s1165_s18 = smov 0   ;;  %s1539_s0 = inlined_call_operand.vmem [shape: f32[256,18], index: 0, kind: input, shape index: {}]   ;;  %s1540_s1 = inlined_call_operand.vmem [shape: f32[18,5], index: 1, kind: input, shape index: {}]   ;;  %s1541_s2 = inlined_call_operand.vmem [shape: f32[5,45], index: 2, kind: input, shape index: {}]   ;;  %s1542_s3 = inlined_call_operand.vmem [shape: f32[9,45], index: 3, kind: input, shape index: {}]   ;;  %s1543_s4 = inlined_call_operand.vmem [shape: f32[45,4], index: 4, kind: input, shape index: {}]   ;;  %s1544_s5 = inlined_call_operand.vmem [shape: f32[256,4], index: 5, kind: output, shape index: {}]  }
   0x1 LB: > { %s976_s19 = sadd.s32 4294967295, %s1133_s18   ;;  %p980_p0 = scmp.ge.s32.totalorder %s1133_s18, 1  ;;  %s1133_s18 = sphi %s1165_s18, %s15_s18  }
   0x2   : > { %p188_p1 = scmp.lt.s32.totalorder %s1133_s18, 3 }
   0x4   : > { %p189_p2 = pnand %p980_p0, %p188_p1 }
   0x5   : > { %s981_s24 = sshll.u32 (!%p189_p2), %s976_s19, 4 }
   0x6   : > { %192 = sbr.rel (%p189_p2) target bundleno = 850 (0x352), region = 40  ;;  %p217_p3 = scmp.lt.s32.totalorder (!%p189_p2), %s981_s24, 31 }
   0xb   : > { %v246_v0 = vld [vmem:[%s1540_s1 + $0x10] sm:$0x3]  ;;  %vm296_vm0 = vcmask 1041408   ;;  %v245_v1 = vld [vmem:[%s1540_s1 + $0x8] sm:$0xff]  ;;  %v244_v2 = vld [vmem:[%s1540_s1] sm:$0xff]  ;;  %s1546_s24 = smov (!%p217_p3, %s981_s24), 31 }
   0xc   : > { %985 = vmatpush.msk.msra.mxu0 %vm296_vm0, %v246_v0  ;;  %s982_s27 = sshll.u32 %s1546_s24, 3  ;;  %vm247_vm1 = vcmask 146432   ;;  %vm365_vm2 = vcmask 39936   ;;  %vm695_vm3 = vcmask 1040384   ;;  %vm662_vm4 = vcmask 72704  }
   0xd   : > { %s1190_s30 = scalar_lea.vmem %s1539_s0, %s982_s27  ;;  %vm591_vm5 = vcmask 1044480   ;;  %vm786_vm6 = vcmask 367616   ;;  %s1494_s29 = scalar_lea.vmem %s1544_s5, %s982_s27  ;;  %vm903_vm7 = vcmask 31744  }
   0xe   : > { %314 = vmatpush.msra.mxu0 %v245_v1  ;;  %v1193_v3 = vld [vmem:[%s1190_s30] sm:$0xff]  ;;  %v1198_v4 = vld [vmem:[%s1190_s30 + $0x8] sm:$0xff]  ;;  %v1203_v5 = vld [vmem:[%s1190_s30 + $0x10] sm:$0xff] }
   0xf   : > { %v1208_v6 = vld [vmem:[%s1190_s30 + $0x18] sm:$0xff]  ;;  %v1213_v7 = vld [vmem:[%s1190_s30 + $0x20] sm:$0xff]  ;;  %v1218_v8 = vld [vmem:[%s1190_s30 + $0x28] sm:$0xff] }
  0x10   : > { %315 = vmatpush.msra.mxu0 %v244_v2  ;;  %v1223_v9 = vld [vmem:[%s1190_s30 + $0x30] sm:$0xff]  ;;  %v1228_v10 = vld [vmem:[%s1190_s30 + $0x38] sm:$0xff]  ;;  %v1233_v11 = vld [vmem:[%s1190_s30 + $0x40] sm:$0xff] }
  0x11   : > { %986 = vmatmul.msk.f32.vlgmr.msra.gmra.mxu0 %vm247_vm1, %v1193_v3  ;;  %v1238_v12 = vld [vmem:[%s1190_s30 + $0x48] sm:$0xff]  ;;  %v1243_v13 = vld [vmem:[%s1190_s30 + $0x50] sm:$0xff]  ;;  %v1249_v16 = vld [vmem:[%s1190_s30 + $0x58] sm:$0xff] }
  0x12   : > { %v1255_v19 = vld [vmem:[%s1190_s30 + $0x60] sm:$0xff]  ;;  %v1261_v22 = vld [vmem:[%s1190_s30 + $0x68] sm:$0xff]  ;;  %v1267_v25 = vld [vmem:[%s1190_s30 + $0x70] sm:$0xff] }
  0x13   : > { %v1272_v27 = vld [vmem:[%s1190_s30 + $0x78] sm:$0xff] }
  0x19   : > { %987 = vmatmul.msk.f32.gmra.mxu0 %vm247_vm1, %v1198_v4 }
  0x21   : > { %988 = vmatmul.msk.f32.gmra.mxu0 %vm247_vm1, %v1203_v5 }
  0x29   : > { %989 = vmatmul.msk.f32.gmra.mxu0 %vm247_vm1, %v1208_v6 }
  0x31   : > { %990 = vmatmul.msk.f32.gmra.mxu0 %vm247_vm1, %v1213_v7 }
  0x39   : > { %991 = vmatmul.msk.f32.gmra.mxu0 %vm247_vm1, %v1218_v8 }
  0x41   : > { %992 = vmatmul.msk.f32.gmra.mxu0 %vm247_vm1, %v1223_v9 }
  0x49   : > { %993 = vmatmul.msk.f32.gmra.mxu0 %vm247_vm1, %v1228_v10 }
  0x51   : > { %994 = vmatmul.msk.f32.gmra.mxu0 %vm247_vm1, %v1233_v11 }
  0x59   : > { %995 = vmatmul.msk.f32.gmra.mxu0 %vm247_vm1, %v1238_v12 }
  0x61   : > { %996 = vmatmul.msk.f32.gmra.mxu0 %vm247_vm1, %v1243_v13 }
  0x69   : > { %997 = vmatmul.msk.f32.gmra.mxu0 %vm247_vm1, %v1249_v16 }
  0x71   : > { %998 = vmatmul.msk.f32.gmra.mxu0 %vm247_vm1, %v1255_v19 }
  0x79   : > { %999 = vmatmul.msk.f32.gmra.mxu0 %vm247_vm1, %v1261_v22 }
  0x81   : > { %1000 = vmatmul.msk.f32.gmra.mxu0 %vm247_vm1, %v1267_v25 }
  0x89   : > { %1001 = vmatmul.msk.f32.gmra.mxu0 %vm247_vm1, %v1272_v27 }
  0x8e   : > { %v317_v14 = vpop.f32.mrf.mxu0 }
  0x8f   : > { %v366_v15 = vsel %vm365_vm2, %v317_v14, -inf }
  0x90   : > { %367 = vmax.xlane.f32.xlu0 %v366_v15 }
  0x96   : > { %v320_v17 = vpop.f32.mrf.mxu0 }
  0x97   : > { %v369_v18 = vsel %vm365_vm2, %v320_v17, -inf }
  0x98   : > { %370 = vmax.xlane.f32.xlu0 %v369_v18 }
  0x9e   : > { %v323_v20 = vpop.f32.mrf.mxu0 }
  0x9f   : > { %v372_v21 = vsel %vm365_vm2, %v323_v20, -inf }
  0xa0   : > { %373 = vmax.xlane.f32.xlu1 %v372_v21 }
  0xa6   : > { %v326_v23 = vpop.f32.mrf.mxu0 }
  0xa7   : > { %v375_v24 = vsel %vm365_vm2, %v326_v23, -inf }
  0xa8   : > { %376 = vmax.xlane.f32.xlu1 %v375_v24 }
  0xae   : > { %v329_v26 = vpop.f32.mrf.mxu0 }
  0xaf   : > { %v378_v28 = vsel %vm365_vm2, %v329_v26, -inf }
  0xb0   : > { %379 = vmax.xlane.f32.xlu2 %v378_v28 }
  0xb6   : > { %v332_v29 = vpop.f32.mrf.mxu0 }
  0xb7   : > { %v381_v30 = vsel %vm365_vm2, %v332_v29, -inf }
  0xb8   : > { %382 = vmax.xlane.f32.xlu2 %v381_v30 }
  0xbe   : > { %v335_v31 = vpop.f32.mrf.mxu0 }
  0xbf   : > { %v384_v32 = vsel %vm365_vm2, %v335_v31, -inf }
  0xc0   : > { %385 = vmax.xlane.f32.xlu0 %v384_v32 }
  0xc6   : > { %v1279_v33 = vpop.f32.mrf.mxu0 }
  0xc7   : > { %v387_v34 = vsel %vm365_vm2, %v1279_v33, -inf }
  0xc8   : > { %388 = vmax.xlane.f32.xlu2 %v387_v34 }
  0xce   : > { %v1283_v37 = vpop.f32.mrf.mxu0 }
  0xcf   : > { %v390_v47 = vsel %vm365_vm2, %v1283_v37, -inf }
  0xd6   : > { %v1287_v43 = vpop.f32.mrf.mxu0 }
  0xd7   : > { %v393_v54 = vsel %vm365_vm2, %v1287_v43, -inf }
  0xde   : > { %v1297_v51 = vpop.f32.mrf.mxu0 }
  0xdf   : > { %v396_v61 = vsel %vm365_vm2, %v1297_v51, -inf }
  0xe6   : > { %v1305_v58 = vpop.f32.mrf.mxu0 }
  0xe7   : > { %v399_v15 = vsel %vm365_vm2, %v1305_v58, -inf }
 0x103   : > { %v368_v35 = vpop.xlane.xlu0 %367 }
 0x104   : > { %v414_v36 = vsub.f32 %v317_v14, %v368_v35  ;;  %v1313_v14 = vpop.f32.mrf.mxu0 }
 0x105   : > { %v402_v24 = vsel %vm365_vm2, %v1313_v14, -inf }
 0x106   : > { %v430_v38 = vmul.f32 1.442695, %v414_v36 }
 0x108   : > { %1063 = vpow2.f32 %v430_v38 }
 0x10b   : > { %v371_v39 = vpop.xlane.xlu0 %370 }
 0x10c   : > { %v415_v40 = vsub.f32 %v320_v17, %v371_v39 }
 0x10e   : > { %v1285_v41 = vpop.eup %1063  ;;  %v432_v42 = vmul.f32 1.442695, %v415_v40 }
 0x10f   : > { %v462_v44 = vsel %vm365_vm2, %v1285_v41, 0.0 }
 0x110   : > { %1065 = vpow2.f32 %v432_v42  ;;  %463 = vadd.xlane.f32.xlu1 %v462_v44 }
 0x113   : > { %v374_v45 = vpop.xlane.xlu1 %373 }
 0x114   : > { %v416_v46 = vsub.f32 %v323_v20, %v374_v45 }
 0x116   : > { %v1293_v48 = vpop.eup %1065  ;;  %v434_v49 = vmul.f32 1.442695, %v416_v46  ;;  %v661_v46 = vld [vmem:[%s1542_s3 + $0x8] sm:$0x1] }
 0x117   : > { %v465_v50 = vsel %vm365_vm2, %v1293_v48, 0.0  ;;  %1019 = vmatpush.msk.msra.mxu2 %vm695_vm3, %v661_v46 }
 0x118   : > { %1067 = vpow2.f32 %v434_v49  ;;  %466 = vadd.xlane.f32.xlu0 %v465_v50  ;;  %391 = vmax.xlane.f32.xlu1 %v390_v47  ;;  %v660_v47 = vld [vmem:[%s1542_s3] sm:$0xff] }
 0x119   : > { %714 = vmatpush.msra.mxu2 %v660_v47  ;;  %v542_v49 = vld [vmem:[%s1541_s2] sm:$0x1f] }
 0x11a   : > { %1020 = vmatmul.msk.f32.vlgmr.msra.gmra.mxu2 %vm662_vm4, %v1193_v3  ;;  %1002 = vmatpush.msk.msra.mxu1 %vm591_vm5, %v542_v49 }
 0x11b   : > { %v377_v52 = vpop.xlane.xlu1 %376 }
 0x11c   : > { %v417_v53 = vsub.f32 %v326_v23, %v377_v52 }
 0x11e   : > { %v1301_v55 = vpop.eup %1067  ;;  %v436_v56 = vmul.f32 1.442695, %v417_v53 }
 0x11f   : > { %v468_v57 = vsel %vm365_vm2, %v1301_v55, 0.0 }
 0x120   : > { %1069 = vpow2.f32 %v436_v56  ;;  %469 = vadd.xlane.f32.xlu2 %v468_v57  ;;  %394 = vmax.xlane.f32.xlu0 %v393_v54 }
 0x122   : > { %1021 = vmatmul.msk.f32.gmra.mxu2 %vm662_vm4, %v1198_v4 }
 0x123   : > { %v380_v59 = vpop.xlane.xlu2 %379 }
 0x124   : > { %v418_v60 = vsub.f32 %v329_v26, %v380_v59 }
 0x126   : > { %v1309_v62 = vpop.eup %1069  ;;  %v438_v63 = vmul.f32 1.442695, %v418_v60 }
 0x127   : > { %v471_v0 = vsel %vm365_vm2, %v1309_v62, 0.0 }
 0x128   : > { %1071 = vpow2.f32 %v438_v63  ;;  %472 = vadd.xlane.f32.xlu1 %v471_v0  ;;  %397 = vmax.xlane.f32.xlu2 %v396_v61 }
 0x12a   : > { %1022 = vmatmul.msk.f32.gmra.mxu2 %vm662_vm4, %v1203_v5 }
 0x12b   : > { %v383_v1 = vpop.xlane.xlu2 %382 }
 0x12c   : > { %v419_v2 = vsub.f32 %v332_v29, %v383_v1  ;;  %v1325_v29 = vpop.f32.mrf.mxu0 }
 0x12e   : > { %v1317_v17 = vpop.eup %1071  ;;  %v440_v18 = vmul.f32 1.442695, %v419_v2 }
 0x12f   : > { %v474_v20 = vsel %vm365_vm2, %v1317_v17, 0.0 }
 0x130   : > { %1073 = vpow2.f32 %v440_v18  ;;  %475 = vadd.xlane.f32.xlu0 %v474_v20  ;;  %400 = vmax.xlane.f32.xlu1 %v399_v15 }
 0x132   : > { %1023 = vmatmul.msk.f32.gmra.mxu2 %vm662_vm4, %v1208_v6 }
 0x133   : > { %v386_v21 = vpop.xlane.xlu0 %385 }
 0x134   : > { %v420_v23 = vsub.f32 %v335_v31, %v386_v21  ;;  %v405_v31 = vsel %vm365_vm2, %v1325_v29, -inf  ;;  %v1336_v39 = vpop.f32.mrf.mxu0 }
 0x135   : > { %v408_v40 = vsel %vm365_vm2, %v1336_v39, -inf }
 0x136   : > { %v1323_v26 = vpop.eup %1073  ;;  %v442_v28 = vmul.f32 1.442695, %v420_v23 }
 0x137   : > { %v477_v30 = vsel %vm365_vm2, %v1323_v26, 0.0 }
 0x138   : > { %1075 = vpow2.f32 %v442_v28  ;;  %478 = vadd.xlane.f32.xlu2 %v477_v30  ;;  %403 = vmax.xlane.f32.xlu0 %v402_v24 }
 0x13a   : > { %1024 = vmatmul.msk.f32.gmra.mxu2 %vm662_vm4, %v1213_v7 }
 0x13b   : > { %v389_v32 = vpop.xlane.xlu2 %388 }
 0x13c   : > { %v421_v34 = vsub.f32 %v1279_v33, %v389_v32  ;;  %v1344_v44 = vpop.f32.mrf.mxu0 }
 0x13d   : > { %v411_v45 = vsel %vm365_vm2, %v1344_v44, -inf }
 0x13e   : > { %v1332_v35 = vpop.eup %1075  ;;  %v444_v36 = vmul.f32 1.442695, %v421_v34 }
 0x13f   : > { %v480_v38 = vsel %vm365_vm2, %v1332_v35, 0.0 }
 0x140   : > { %1077 = vpow2.f32 %v444_v36  ;;  %481 = vadd.xlane.f32.xlu1 %v480_v38  ;;  %406 = vmax.xlane.f32.xlu2 %v405_v31  ;;  %v783_v31 = vld [vmem:[%s1543_s4 + $0x18] sm:$0xff] }
 0x142   : > { %1025 = vmatmul.msk.f32.gmra.mxu2 %vm662_vm4, %v1218_v8 }
 0x146   : > { %v1340_v42 = vpop.eup %1077 }
 0x147   : > { %v483_v33 = vsel %vm365_vm2, %v1340_v42, 0.0 }
 0x148   : > { %484 = vadd.xlane.f32.xlu0 %v483_v33  ;;  %409 = vmax.xlane.f32.xlu1 %v408_v40  ;;  %v782_v33 = vld [vmem:[%s1543_s4 + $0x10] sm:$0xff] }
 0x14a   : > { %1026 = vmatmul.msk.f32.gmra.mxu2 %vm662_vm4, %v1223_v9 }
 0x150   : > { %412 = vmax.xlane.f32.xlu0 %v411_v45 }
 0x152   : > { %1027 = vmatmul.msk.f32.gmra.mxu2 %vm662_vm4, %v1228_v10 }
 0x15a   : > { %1028 = vmatmul.msk.f32.gmra.mxu2 %vm662_vm4, %v1233_v11  ;;  %v785_v11 = vld [vmem:[%s1543_s4 + $0x28] sm:$0x1f] }
 0x15b   : > { %1036 = vmatpush.msk.msra.mxu3 %vm591_vm5, %v785_v11 }
 0x162   : > { %1029 = vmatmul.msk.f32.gmra.mxu2 %vm662_vm4, %v1238_v12 }
 0x16a   : > { %1030 = vmatmul.msk.f32.gmra.mxu2 %vm662_vm4, %v1243_v13 }
 0x172   : > { %1031 = vmatmul.msk.f32.gmra.mxu2 %vm662_vm4, %v1249_v16 }
 0x17a   : > { %1032 = vmatmul.msk.f32.gmra.mxu2 %vm662_vm4, %v1255_v19  ;;  %v781_v19 = vld [vmem:[%s1543_s4 + $0x8] sm:$0xff] }
 0x182   : > { %1033 = vmatmul.msk.f32.gmra.mxu2 %vm662_vm4, %v1261_v22 }
 0x183   : > { %v464_v50 = vpop.xlane.xlu1 %463 }
 0x184   : > { %1079 = vrcp.f32 %v464_v50 }
 0x18a   : > { %v1080_v3 = vpop.eup %1079  ;;  %1034 = vmatmul.msk.f32.gmra.mxu2 %vm662_vm4, %v1267_v25 }
 0x18b   : > { %v467_v52 = vpop.xlane.xlu0 %466  ;;  %v392_v53 = vpop.xlane.xlu1 %391  ;;  %v526_v54 = vmul.f32 %v1080_v3, %v1285_v41 }
 0x18c   : > { %1081 = vrcp.f32 %v467_v52  ;;  %v422_v56 = vsub.f32 %v1283_v37, %v392_v53 }
 0x18d   : > { %1003 = vmatmul.msk.f32.vlgmr.msra.gmra.mxu1 %vm365_vm2, %v526_v54 }
 0x18e   : > { %v446_v4 = vmul.f32 1.442695, %v422_v56 }
 0x190   : > { %1083 = vpow2.f32 %v446_v4 }
 0x192   : > { %v1082_v5 = vpop.eup %1081  ;;  %1035 = vmatmul.msk.f32.gmra.mxu2 %vm662_vm4, %v1272_v27 }
 0x193   : > { %v470_v6 = vpop.xlane.xlu2 %469  ;;  %v395_v57 = vpop.xlane.xlu0 %394  ;;  %v527_v7 = vmul.f32 %v1082_v5, %v1293_v48 }
 0x194   : > { %1085 = vrcp.f32 %v470_v6  ;;  %v423_v59 = vsub.f32 %v1287_v43, %v395_v57 }
 0x195   : > { %1004 = vmatmul.msk.f32.gmra.mxu1 %vm365_vm2, %v527_v7 }
 0x196   : > { %v1376_v41 = vpop.eup %1083  ;;  %v448_v37 = vmul.f32 1.442695, %v423_v59 }
 0x197   : > { %v486_v60 = vsel %vm365_vm2, %v1376_v41, 0.0 }
 0x198   : > { %1087 = vpow2.f32 %v448_v37  ;;  %487 = vadd.xlane.f32.xlu2 %v486_v60 }
 0x19a   : > { %v1086_v8 = vpop.eup %1085 }
 0x19b   : > { %v473_v61 = vpop.xlane.xlu1 %472  ;;  %v398_v63 = vpop.xlane.xlu2 %397  ;;  %v528_v48 = vmul.f32 %v1086_v8, %v1301_v55 }
 0x19c   : > { %1089 = vrcp.f32 %v473_v61  ;;  %v424_v43 = vsub.f32 %v1297_v51, %v398_v63 }
 0x19d   : > { %1005 = vmatmul.msk.f32.gmra.mxu1 %vm365_vm2, %v528_v48  ;;  %v716_v57 = vpop.f32.mrf.mxu2 }
 0x19e   : > { %v1385_v0 = vpop.eup %1087  ;;  %v450_v1 = vmul.f32 1.442695, %v424_v43 }
 0x19f   : > { %v489_v2 = vsel %vm365_vm2, %v1385_v0, 0.0 }
 0x1a0   : > { %1091 = vpow2.f32 %v450_v1  ;;  %490 = vadd.xlane.f32.xlu1 %v489_v2 }
 0x1a2   : > { %v1090_v9 = vpop.eup %1089 }
 0x1a3   : > { %v476_v15 = vpop.xlane.xlu0 %475  ;;  %v401_v18 = vpop.xlane.xlu1 %400  ;;  %v529_v55 = vmul.f32 %v1090_v9, %v1309_v62 }
 0x1a4   : > { %1093 = vrcp.f32 %v476_v15  ;;  %v425_v51 = vsub.f32 %v1305_v58, %v401_v18 }
 0x1a5   : > { %1006 = vmatmul.msk.f32.gmra.mxu1 %vm365_vm2, %v529_v55  ;;  %v719_v7 = vpop.f32.mrf.mxu2 }
 0x1a6   : > { %v1394_v20 = vpop.eup %1091  ;;  %v452_v21 = vmul.f32 1.442695, %v425_v51 }
 0x1a7   : > { %v492_v23 = vsel %vm365_vm2, %v1394_v20, 0.0 }
 0x1a8   : > { %1095 = vpow2.f32 %v452_v21  ;;  %493 = vadd.xlane.f32.xlu2 %v492_v23 }
 0x1aa   : > { %v1094_v10 = vpop.eup %1093 }
 0x1ab   : > { %v479_v24 = vpop.xlane.xlu2 %478  ;;  %v404_v28 = vpop.xlane.xlu0 %403  ;;  %v530_v62 = vmul.f32 %v1094_v10, %v1317_v17 }
 0x1ac   : > { %1097 = vrcp.f32 %v479_v24  ;;  %v426_v58 = vsub.f32 %v1313_v14, %v404_v28  ;;  %v784_v14 = vld [vmem:[%s1543_s4 + $0x20] sm:$0xff] }
 0x1ad   : > { %1007 = vmatmul.msk.f32.gmra.mxu1 %vm365_vm2, %v530_v62  ;;  %849 = vmatpush.msra.mxu3 %v784_v14  ;;  %v722_v25 = vpop.f32.mrf.mxu2 }
 0x1ae   : > { %v1403_v30 = vpop.eup %1095  ;;  %v454_v32 = vmul.f32 1.442695, %v426_v58 }
 0x1af   : > { %v495_v34 = vsel %vm365_vm2, %v1403_v30, 0.0  ;;  %850 = vmatpush.msra.mxu3 %v783_v31 }
 0x1b0   : > { %1099 = vpow2.f32 %v454_v32  ;;  %496 = vadd.xlane.f32.xlu0 %v495_v34 }
 0x1b1   : > { %851 = vmatpush.msra.mxu3 %v782_v33 }
 0x1b2   : > { %v1098_v17 = vpop.eup %1097 }
 0x1b3   : > { %v482_v36 = vpop.xlane.xlu1 %481  ;;  %v407_v38 = vpop.xlane.xlu2 %406  ;;  %v531_v12 = vmul.f32 %v1098_v17, %v1323_v26  ;;  %852 = vmatpush.msra.mxu3 %v781_v19 }
 0x1b4   : > { %1101 = vrcp.f32 %v482_v36  ;;  %v427_v40 = vsub.f32 %v1325_v29, %v407_v38 }
 0x1b5   : > { %1008 = vmatmul.msk.f32.gmra.mxu1 %vm365_vm2, %v531_v12  ;;  %v725_v48 = vpop.f32.mrf.mxu2 }
 0x1b6   : > { %v1425_v45 = vpop.eup %1099  ;;  %v456_v46 = vmul.f32 1.442695, %v427_v40 }
 0x1b7   : > { %v498_v47 = vsel %vm365_vm2, %v1425_v45, 0.0 }
 0x1b8   : > { %1103 = vpow2.f32 %v456_v46  ;;  %499 = vadd.xlane.f32.xlu1 %v498_v47 }
 0x1ba   : > { %v1102_v26 = vpop.eup %1101 }
 0x1bb   : > { %v485_v29 = vpop.xlane.xlu0 %484  ;;  %v410_v49 = vpop.xlane.xlu1 %409  ;;  %v532_v50 = vmul.f32 %v1102_v26, %v1332_v35 }
 0x1bc   : > { %1105 = vrcp.f32 %v485_v29  ;;  %v428_v3 = vsub.f32 %v1336_v39, %v410_v49 }
 0x1bd   : > { %1009 = vmatmul.msk.f32.gmra.mxu1 %vm365_vm2, %v532_v50 }
 0x1be   : > { %v1434_v52 = vpop.eup %1103  ;;  %v458_v53 = vmul.f32 1.442695, %v428_v3 }
 0x1bf   : > { %v501_v54 = vsel %vm365_vm2, %v1434_v52, 0.0 }
 0x1c0   : > { %1107 = vpow2.f32 %v458_v53  ;;  %502 = vadd.xlane.f32.xlu2 %v501_v54 }
 0x1c2   : > { %v1106_v13 = vpop.eup %1105 }
 0x1c3   : > { %v413_v56 = vpop.xlane.xlu0 %412  ;;  %v533_v35 = vmul.f32 %v1106_v13, %v1340_v42 }
 0x1c4   : > { %v429_v4 = vsub.f32 %v1344_v44, %v413_v56  ;;  %v780_v44 = vld [vmem:[%s1543_s4] sm:$0xff] }
 0x1c5   : > { %1010 = vmatmul.msk.f32.gmra.mxu1 %vm365_vm2, %v533_v35  ;;  %853 = vmatpush.msra.mxu3 %v780_v44 }
 0x1c6   : > { %v1443_v39 = vpop.eup %1107  ;;  %v460_v5 = vmul.f32 1.442695, %v429_v4 }
 0x1c7   : > { %v504_v6 = vsel %vm365_vm2, %v1443_v39, 0.0 }
 0x1c8   : > { %1109 = vpow2.f32 %v460_v5  ;;  %505 = vadd.xlane.f32.xlu0 %v504_v6 }
 0x1ce   : > { %v1449_v16 = vpop.eup %1109 }
 0x1cf   : > { %v507_v42 = vsel %vm365_vm2, %v1449_v16, 0.0 }
 0x1d0   : > { %508 = vadd.xlane.f32.xlu1 %v507_v42 }
 0x20a   : > { %v612_v22 = vpop.f32.mrf.mxu1 }
 0x20b   : > { %v764_v59 = vmul.f32 %v716_v57, %v612_v22  ;;  %v488_v37 = vpop.xlane.xlu2 %487 }
 0x20c   : > { %1111 = vrcp.f32 %v488_v37 }
 0x20d   : > { %1037 = vmatmul.msk.f32.vlgmr.msra.gmra.mxu3 %vm786_vm6, %v764_v59 }
 0x212   : > { %v1112_v27 = vpop.eup %1111  ;;  %v615_v60 = vpop.f32.mrf.mxu1 }
 0x213   : > { %v765_v8 = vmul.f32 %v719_v7, %v615_v60  ;;  %v491_v61 = vpop.xlane.xlu1 %490  ;;  %v534_v63 = vmul.f32 %v1112_v27, %v1376_v41  ;;  %v728_v41 = vpop.f32.mrf.mxu2 }
 0x214   : > { %1113 = vrcp.f32 %v491_v61 }
 0x215   : > { %1011 = vmatmul.msk.f32.gmra.mxu1 %vm365_vm2, %v534_v63  ;;  %1038 = vmatmul.msk.f32.gmra.mxu3 %vm786_vm6, %v765_v8 }
 0x21a   : > { %v1114_v43 = vpop.eup %1113  ;;  %v618_v1 = vpop.f32.mrf.mxu1 }
 0x21b   : > { %v766_v2 = vmul.f32 %v722_v25, %v618_v1  ;;  %v494_v9 = vpop.xlane.xlu2 %493  ;;  %v535_v15 = vmul.f32 %v1114_v43, %v1385_v0  ;;  %v731_v58 = vpop.f32.mrf.mxu2 }
 0x21c   : > { %1115 = vrcp.f32 %v494_v9 }
 0x21d   : > { %1012 = vmatmul.msk.f32.gmra.mxu1 %vm365_vm2, %v535_v15  ;;  %1039 = vmatmul.msk.f32.gmra.mxu3 %vm786_vm6, %v766_v2 }
 0x222   : > { %v1116_v18 = vpop.eup %1115  ;;  %v621_v55 = vpop.f32.mrf.mxu1 }
 0x223   : > { %v767_v51 = vmul.f32 %v725_v48, %v621_v55  ;;  %v497_v21 = vpop.xlane.xlu0 %496  ;;  %v536_v23 = vmul.f32 %v1116_v18, %v1394_v20  ;;  %v734_v17 = vpop.f32.mrf.mxu2 }
 0x224   : > { %1117 = vrcp.f32 %v497_v21 }
 0x225   : > { %1013 = vmatmul.msk.f32.gmra.mxu1 %vm365_vm2, %v536_v23  ;;  %1040 = vmatmul.msk.f32.gmra.mxu3 %vm786_vm6, %v767_v51 }
 0x22a   : > { %v1118_v10 = vpop.eup %1117  ;;  %v624_v24 = vpop.f32.mrf.mxu1 }
 0x22b   : > { %v768_v0 = vmul.f32 %v728_v41, %v624_v24  ;;  %v500_v28 = vpop.xlane.xlu1 %499  ;;  %v537_v62 = vmul.f32 %v1118_v10, %v1403_v30  ;;  %v737_v40 = vpop.f32.mrf.mxu2 }
 0x22c   : > { %1119 = vrcp.f32 %v500_v28 }
 0x22d   : > { %1014 = vmatmul.msk.f32.gmra.mxu1 %vm365_vm2, %v537_v62  ;;  %1041 = vmatmul.msk.f32.gmra.mxu3 %vm786_vm6, %v768_v0 }
 0x232   : > { %v1120_v32 = vpop.eup %1119  ;;  %v627_v34 = vpop.f32.mrf.mxu1 }
 0x233   : > { %v769_v20 = vmul.f32 %v731_v58, %v627_v34  ;;  %v503_v11 = vpop.xlane.xlu2 %502  ;;  %v538_v14 = vmul.f32 %v1120_v32, %v1425_v45  ;;  %v740_v50 = vpop.f32.mrf.mxu2 }
 0x234   : > { %1121 = vrcp.f32 %v503_v11 }
 0x235   : > { %1015 = vmatmul.msk.f32.gmra.mxu1 %vm365_vm2, %v538_v14  ;;  %1042 = vmatmul.msk.f32.gmra.mxu3 %vm786_vm6, %v769_v20 }
 0x23a   : > { %v1122_v31 = vpop.eup %1121  ;;  %v630_v30 = vpop.f32.mrf.mxu1 }
 0x23b   : > { %v770_v36 = vmul.f32 %v734_v17, %v630_v30  ;;  %v506_v38 = vpop.xlane.xlu0 %505  ;;  %v539_v12 = vmul.f32 %v1122_v31, %v1434_v52  ;;  %v743_v3 = vpop.f32.mrf.mxu2 }
 0x23c   : > { %1123 = vrcp.f32 %v506_v38 }
 0x23d   : > { %1016 = vmatmul.msk.f32.gmra.mxu1 %vm365_vm2, %v539_v12  ;;  %1043 = vmatmul.msk.f32.gmra.mxu3 %vm786_vm6, %v770_v36 }
 0x242   : > { %v1124_v33 = vpop.eup %1123  ;;  %v633_v45 = vpop.f32.mrf.mxu1 }
 0x243   : > { %v771_v46 = vmul.f32 %v737_v40, %v633_v45  ;;  %v509_v47 = vpop.xlane.xlu1 %508  ;;  %v540_v26 = vmul.f32 %v1124_v33, %v1443_v39  ;;  %v746_v13 = vpop.f32.mrf.mxu2 }
 0x244   : > { %1125 = vrcp.f32 %v509_v47 }
 0x245   : > { %1017 = vmatmul.msk.f32.gmra.mxu1 %vm365_vm2, %v540_v26  ;;  %1044 = vmatmul.msk.f32.gmra.mxu3 %vm786_vm6, %v771_v46 }
 0x24a   : > { %v1126_v29 = vpop.eup %1125 }
 0x24b   : > { %v541_v49 = vmul.f32 %v1126_v29, %v1449_v16  ;;  %v749_v5 = vpop.f32.mrf.mxu2 }
 0x24d   : > { %1018 = vmatmul.msk.f32.gmra.mxu1 %vm365_vm2, %v541_v49 }
 0x253   : > { %v752_v44 = vpop.f32.mrf.mxu2 }
 0x25b   : > { %v755_v37 = vpop.f32.mrf.mxu2 }
 0x263   : > { %v758_v8 = vpop.f32.mrf.mxu2 }
 0x26b   : > { %v761_v1 = vpop.f32.mrf.mxu2 }
 0x290   : > { %v855_v52 = vpop.f32.mrf.mxu3 }
 0x291   : > { %904 = vst.msk [vmem:[%s1494_s29] sm:$0xff] %vm903_vm7, %v855_v52 }
 0x292   : > { %v636_v53 = vpop.f32.mrf.mxu1 }
 0x293   : > { %v772_v54 = vmul.f32 %v740_v50, %v636_v53 }
 0x295   : > { %1045 = vmatmul.msk.f32.gmra.mxu3 %vm786_vm6, %v772_v54 }
 0x298   : > { %v858_v56 = vpop.f32.mrf.mxu3 }
 0x299   : > { %905 = vst.msk [vmem:[%s1494_s29 + $0x8] sm:$0xff] %vm903_vm7, %v858_v56 }
 0x29a   : > { %v639_v35 = vpop.f32.mrf.mxu1 }
 0x29b   : > { %v773_v4 = vmul.f32 %v743_v3, %v639_v35 }
 0x29d   : > { %1046 = vmatmul.msk.f32.gmra.mxu3 %vm786_vm6, %v773_v4 }
 0x2a0   : > { %v861_v39 = vpop.f32.mrf.mxu3 }
 0x2a1   : > { %906 = vst.msk [vmem:[%s1494_s29 + $0x10] sm:$0xff] %vm903_vm7, %v861_v39 }
 0x2a2   : > { %v642_v6 = vpop.f32.mrf.mxu1 }
 0x2a3   : > { %v774_v16 = vmul.f32 %v746_v13, %v642_v6 }
 0x2a5   : > { %1047 = vmatmul.msk.f32.gmra.mxu3 %vm786_vm6, %v774_v16 }
 0x2a8   : > { %v864_v42 = vpop.f32.mrf.mxu3 }
 0x2a9   : > { %907 = vst.msk [vmem:[%s1494_s29 + $0x18] sm:$0xff] %vm903_vm7, %v864_v42 }
 0x2aa   : > { %v645_v19 = vpop.f32.mrf.mxu1 }
 0x2ab   : > { %v775_v57 = vmul.f32 %v749_v5, %v645_v19 }
 0x2ad   : > { %1048 = vmatmul.msk.f32.gmra.mxu3 %vm786_vm6, %v775_v57 }
 0x2b0   : > { %v867_v7 = vpop.f32.mrf.mxu3 }
 0x2b1   : > { %908 = vst.msk [vmem:[%s1494_s29 + $0x20] sm:$0xff] %vm903_vm7, %v867_v7 }
 0x2b2   : > { %v648_v22 = vpop.f32.mrf.mxu1 }
 0x2b3   : > { %v776_v59 = vmul.f32 %v752_v44, %v648_v22 }
 0x2b5   : > { %1049 = vmatmul.msk.f32.gmra.mxu3 %vm786_vm6, %v776_v59 }
 0x2b8   : > { %v870_v25 = vpop.f32.mrf.mxu3 }
 0x2b9   : > { %909 = vst.msk [vmem:[%s1494_s29 + $0x28] sm:$0xff] %vm903_vm7, %v870_v25 }
 0x2ba   : > { %v651_v27 = vpop.f32.mrf.mxu1 }
 0x2bb   : > { %v777_v60 = vmul.f32 %v755_v37, %v651_v27 }
 0x2bd   : > { %1050 = vmatmul.msk.f32.gmra.mxu3 %vm786_vm6, %v777_v60 }
 0x2c0   : > { %v873_v61 = vpop.f32.mrf.mxu3 }
 0x2c1   : > { %910 = vst.msk [vmem:[%s1494_s29 + $0x30] sm:$0xff] %vm903_vm7, %v873_v61 }
 0x2c2   : > { %v654_v63 = vpop.f32.mrf.mxu1 }
 0x2c3   : > { %v778_v48 = vmul.f32 %v758_v8, %v654_v63 }
 0x2c5   : > { %1051 = vmatmul.msk.f32.gmra.mxu3 %vm786_vm6, %v778_v48 }
 0x2c8   : > { %v876_v43 = vpop.f32.mrf.mxu3 }
 0x2c9   : > { %911 = vst.msk [vmem:[%s1494_s29 + $0x38] sm:$0xff] %vm903_vm7, %v876_v43 }
 0x2ca   : > { %v657_v2 = vpop.f32.mrf.mxu1 }
 0x2cb   : > { %v779_v9 = vmul.f32 %v761_v1, %v657_v2 }
 0x2cd   : > { %1052 = vmatmul.msk.f32.gmra.mxu3 %vm786_vm6, %v779_v9 }
 0x318   : > { %v879_v15 = vpop.f32.mrf.mxu3 }
 0x319   : > { %912 = vst.msk [vmem:[%s1494_s29 + $0x40] sm:$0xff] %vm903_vm7, %v879_v15 }
 0x320   : > { %v882_v18 = vpop.f32.mrf.mxu3 }
 0x321   : > { %913 = vst.msk [vmem:[%s1494_s29 + $0x48] sm:$0xff] %vm903_vm7, %v882_v18 }
 0x328   : > { %v885_v55 = vpop.f32.mrf.mxu3 }
 0x329   : > { %914 = vst.msk [vmem:[%s1494_s29 + $0x50] sm:$0xff] %vm903_vm7, %v885_v55 }
 0x330   : > { %v888_v41 = vpop.f32.mrf.mxu3 }
 0x331   : > { %915 = vst.msk [vmem:[%s1494_s29 + $0x58] sm:$0xff] %vm903_vm7, %v888_v41 }
 0x338   : > { %v891_v51 = vpop.f32.mrf.mxu3 }
 0x339   : > { %916 = vst.msk [vmem:[%s1494_s29 + $0x60] sm:$0xff] %vm903_vm7, %v891_v51 }
 0x340   : > { %v894_v21 = vpop.f32.mrf.mxu3 }
 0x341   : > { %917 = vst.msk [vmem:[%s1494_s29 + $0x68] sm:$0xff] %vm903_vm7, %v894_v21 }
 0x348   : > { %v897_v23 = vpop.f32.mrf.mxu3 }
 0x349   : > { %918 = vst.msk [vmem:[%s1494_s29 + $0x70] sm:$0xff] %vm903_vm7, %v897_v23 }
 0x350   : > { %v900_v10 = vpop.f32.mrf.mxu3 }
 0x351   : > { %919 = vst.msk [vmem:[%s1494_s29 + $0x78] sm:$0xff] %vm903_vm7, %v900_v10 }
 0x352 PF: > { %s15_s18 = sadd.s32 1, %s1133_s18  }
 0x353   : > { %p12_p4 = scmp.ge.s32.totalorder %s15_s18, 4  }
 0x355   :  { %14 = sbr.rel (!%p12_p4) target bundleno = 1 (0x1), region = 70 }

</bundles_post_ra>
